<compile_context>
chip_gen: v5e
topology: v5e:2x2
jax: 0.10.0
libtpu: 0.0.40
codegen_flags: <defaults>
</compile_context>

<pallas_src>
import jax
import jax.numpy as jnp
from jax.experimental import pallas as pl
from jax.experimental.pallas import tpu as pltpu


def _round_up(a, b):
    return (a + b - 1) // b * b


def _cdiv(a, b):
    return (a + b - 1) // b


# ---------------------------------------------------------------------------
# Kernels
# ---------------------------------------------------------------------------
def stats_kernel(p_ref, w_ref, s_ref, acc_ref):
    """Pass 1 (recompute path): per-channel sum / sum-of-squares of the conv output."""
    @pl.when(pl.program_id(1) == 0)
    def _():
        acc_ref[...] = jnp.zeros_like(acc_ref)

    conv = jnp.dot(p_ref[...], w_ref[...], preferred_element_type=jnp.float32)
    acc_ref[0:1, :] = acc_ref[0:1, :] + jnp.sum(conv, axis=0, keepdims=True)
    acc_ref[1:2, :] = acc_ref[1:2, :] + jnp.sum(conv * conv, axis=0, keepdims=True)

    @pl.when(pl.program_id(1) == pl.num_programs(1) - 1)
    def _():
        s_ref[...] = acc_ref[...]


def conv_stats_kernel(p_ref, w_ref, s_ref, conv_ref, acc_ref):
    """Pass 1 (stored-conv path): emit the f32 conv tile AND accumulate stats."""
    @pl.when(pl.program_id(1) == 0)
    def _():
        acc_ref[...] = jnp.zeros_like(acc_ref)

    conv = jnp.dot(p_ref[...], w_ref[...], preferred_element_type=jnp.float32)
    conv_ref[...] = conv
    acc_ref[0:1, :] = acc_ref[0:1, :] + jnp.sum(conv, axis=0, keepdims=True)
    acc_ref[1:2, :] = acc_ref[1:2, :] + jnp.sum(conv * conv, axis=0, keepdims=True)

    @pl.when(pl.program_id(1) == pl.num_programs(1) - 1)
    def _():
        s_ref[...] = acc_ref[...]


def affine_kernel(conv_ref, scale_ref, shift_ref, o_ref):
    """Pass 2 (stored-conv path): elementwise fused BN affine + LeakyReLU(0.2)."""
    y = conv_ref[...] * scale_ref[...] + shift_ref[...]
    o_ref[...] = jnp.where(y >= 0, y, 0.2 * y).astype(o_ref.dtype)


def conv_affine_kernel(p_ref, w_ref, scale_ref, shift_ref, o_ref):
    """Pass 2 (recompute path): conv tile + fused BN affine + LeakyReLU(0.2)."""
    conv = jnp.dot(p_ref[...], w_ref[...], preferred_element_type=jnp.float32)
    y = conv * scale_ref[...] + shift_ref[...]
    o_ref[...] = jnp.where(y >= 0, y, 0.2 * y).astype(o_ref.dtype)


# ---------------------------------------------------------------------------
# Helpers
# ---------------------------------------------------------------------------
def im2col_nchw(x, kh, kw, stride, pad):
    """NCHW input -> [N*OH*OW, Cin*KH*KW] patch matrix ((Cin,KH,KW) flatten order)."""
    n, c, h, w = x.shape
    oh = (h + 2 * pad - kh) // stride + 1
    ow = (w + 2 * pad - kw) // stride + 1
    xp = jnp.pad(x, ((0, 0), (0, 0), (pad, pad), (pad, pad)))
    cols = []
    for i in range(kh):
        for j in range(kw):
            cols.append(xp[:, :, i:i + stride * oh:stride, j:j + stride * ow:stride])
    patches = jnp.stack(cols, axis=2).reshape(n, c * kh * kw, oh, ow)
    patches = patches.transpose(0, 2, 3, 1).reshape(n * oh * ow, c * kh * kw)
    return patches, oh, ow


def _vmem_limit_bytes():
    """~75% of physical VMEM, capped at 96 MiB (=> ~48 MiB on v7x, 96 MiB on v5e/v6e)."""
    cap = 64 * 1024 * 1024
    try:
        cap = int(pltpu.get_tpu_info().vmem_capacity_bytes)
    except Exception:
        pass
    return max(32 * 1024 * 1024, min(cap * 3 // 4, 96 * 1024 * 1024))


def _choose_tile_rows(m, kp, cp, tm_max, vmem_budget, store_conv):
    """Pick the M row tile: fit ~70% of the VMEM budget, 16-aligned, minimal padding."""
    # Per-row VMEM cost of the double-buffered pipeline blocks.
    per_row = 4 * kp + 8 * cp              # bf16 patches (x2) + f32 output block (x2)
    if store_conv:
        per_row += 8 * cp                  # pass 2 also streams the stored f32 conv in
    fixed = 2 * kp * cp * 2 + 2 * 8 * cp * 4 + (1 << 20)   # weights(x2) + stats + slack
    avail = max(vmem_budget * 7 // 10 - fixed, per_row * 16)
    tm_fit = max(16, (avail // per_row) // 16 * 16)
    tm_cap = max(16, min(tm_max, tm_fit))
    # Balance tiles so (mp - m) padding stays < 16 rows instead of up to tm-1.
    n_tiles = max(1, _cdiv(m, tm_cap))
    return _round_up(_cdiv(m, n_tiles), 16)


# ---------------------------------------------------------------------------
# Wrapper
# ---------------------------------------------------------------------------
def encoder_forward(x, weight, gamma, beta, *, stride=2, pad=1, eps=1e-5,
                    tm_max=2048, out_dtype=jnp.float32):
    """x: NCHW f32, weight: [Cout, Cin, KH, KW], gamma/beta: [Cout]."""
    n, cin, h, w = x.shape
    cout, _, kh, kw = weight.shape

    patches, oh, ow = im2col_nchw(x, kh, kw, stride, pad)        # [M, K] f32
    m, k = patches.shape

    kp = _round_up(k, 128)
    cp = _round_up(cout, 128)
    # Large-K layers: store the conv from pass 1 instead of recomputing it in pass 2.
    store_conv = kp > 2 * cp

    vmem_bytes = _vmem_limit_bytes()
    tm = _choose_tile_rows(m, kp, cp, tm_max, vmem_bytes, store_conv)

    n_tiles = max(1, _cdiv(m, tm))
    num_shards = 2 if n_tiles >= 2 else 1      # v7x: one shard per TensorCore
    inner = _cdiv(n_tiles, num_shards)
    mp = tm * num_shards * inner
    n_tiles = num_shards * inner

    # Padded patch rows are exact zeros -> contribute nothing to the channel sums
    # (we divide by the real M below); padded rows/channels are sliced off at the end.
    patches_p = jnp.pad(patches, ((0, mp - m), (0, kp - k))).astype(jnp.bfloat16)
    w_p = jnp.pad(weight.reshape(cout, cin * kh * kw).T,
                  ((0, kp - k), (0, cp - cout))).astype(jnp.bfloat16)
    gamma_p = jnp.pad(gamma.astype(jnp.float32), (0, cp - cout))
    beta_p = jnp.pad(beta.astype(jnp.float32), (0, cp - cout))

    pass1_params = pltpu.CompilerParams(
        dimension_semantics=("parallel", "arbitrary"),
        vmem_limit_bytes=vmem_bytes)
    pass2_params = pltpu.CompilerParams(
        dimension_semantics=("parallel",),
        vmem_limit_bytes=vmem_bytes)

    patch_spec = pl.BlockSpec((tm, kp), lambda s, i: (s * inner + i, 0))
    weight_spec = pl.BlockSpec((kp, cp), lambda s, i: (0, 0))
    stats_spec = pl.BlockSpec((8, cp), lambda s, i: (s, 0))
    stats_shape = jax.ShapeDtypeStruct((num_shards * 8, cp), jnp.float32)
    scratch = [pltpu.VMEM((8, cp), jnp.float32)]

    # ---- pass 1: conv (+ optional store) and whole-batch channel statistics -----
    if store_conv:
        conv_spec = pl.BlockSpec((tm, cp), lambda s, i: (s * inner + i, 0))
        stats, conv2d = pl.pallas_call(
            conv_stats_kernel,
            out_shape=(stats_shape, jax.ShapeDtypeStruct((mp, cp), jnp.float32)),
            grid_spec=pltpu.PrefetchScalarGridSpec(
                num_scalar_prefetch=0,
                grid=(num_shards, inner),
                in_specs=[patch_spec, weight_spec],
                out_specs=(stats_spec, conv_spec),
                scratch_shapes=scratch),
            compiler_params=pass1_params,
            cost_estimate=pl.CostEstimate(
                flops=2 * mp * kp * cp + 4 * mp * cp,
                transcendentals=0,
                bytes_accessed=mp * kp * 2 + kp * cp * 2 + mp * cp * 4
                               + num_shards * 8 * cp * 4),
        )(patches_p, w_p)
    else:
        conv2d = None
        stats = pl.pallas_call(
            stats_kernel,
            out_shape=stats_shape,
            grid_spec=pltpu.PrefetchScalarGridSpec(
                num_scalar_prefetch=0,
                grid=(num_shards, inner),
                in_specs=[patch_spec, weight_spec],
                out_specs=stats_spec,
                scratch_shapes=scratch),
            compiler_params=pass1_params,
            cost_estimate=pl.CostEstimate(
                flops=2 * mp * kp * cp + 4 * mp * cp,
                transcendentals=0,
                bytes_accessed=mp * kp * 2 + kp * cp * 2 + num_shards * 8 * cp * 4),
        )(patches_p, w_p)

    # ---- tiny per-channel finalization (plain XLA; cp-element f32 vectors) ------
    parts = stats.reshape(num_shards, 8, cp)
    inv_m = jnp.float32(1.0 / m)
    mean = jnp.sum(parts[:, 0, :], axis=0) * inv_m
    var = jnp.maximum(jnp.sum(parts[:, 1, :], axis=0) * inv_m - mean * mean, 0.0)
    scale = gamma_p * jax.lax.rsqrt(var + jnp.float32(eps))
    shift = beta_p - mean * scale
    # TODO(synk): switch to a shifted / two-pass variance if channel means dominate std.

    flat_out_spec = pl.BlockSpec((tm, cp), lambda i: (i, 0))
    bcast_spec = pl.BlockSpec((1, cp), lambda i: (0, 0))

    # ---- pass 2: fused affine + LeakyReLU, fully parallel over M ----------------
    if store_conv:
        out2d = pl.pallas_call(
            affine_kernel,
            out_shape=jax.ShapeDtypeStruct((mp, cp), out_dtype),
            grid_spec=pltpu.PrefetchScalarGridSpec(
                num_scalar_prefetch=0,
                grid=(n_tiles,),
                in_specs=[pl.BlockSpec((tm, cp), lambda i: (i, 0)),
                          bcast_spec, bcast_spec],
                out_specs=flat_out_spec),
            compiler_params=pass2_params,
            cost_estimate=pl.CostEstimate(
                flops=3 * mp * cp, transcendentals=0,
                bytes_accessed=mp * cp * 4
                               + mp * cp * jnp.dtype(out_dtype).itemsize),
        )(conv2d, scale.reshape(1, cp), shift.reshape(1, cp))
    else:
        out2d = pl.pallas_call(
            conv_affine_kernel,
            out_shape=jax.ShapeDtypeStruct((mp, cp), out_dtype),
            grid_spec=pltpu.PrefetchScalarGridSpec(
                num_scalar_prefetch=0,
                grid=(n_tiles,),
                in_specs=[pl.BlockSpec((tm, kp), lambda i: (i, 0)),
                          pl.BlockSpec((kp, cp), lambda i: (0, 0)),
                          bcast_spec, bcast_spec],
                out_specs=flat_out_spec),
            compiler_params=pass2_params,
            cost_estimate=pl.CostEstimate(
                flops=2 * mp * kp * cp + 3 * mp * cp, transcendentals=0,
                bytes_accessed=mp * kp * 2 + kp * cp * 2
                               + mp * cp * jnp.dtype(out_dtype).itemsize),
        )(patches_p, w_p, scale.reshape(1, cp), shift.reshape(1, cp))

    # [M, Cout] -> [N, OH, OW, Cout] -> NCHW
    return out2d[:m, :cout].reshape(n, oh, ow, cout).transpose(0, 3, 1, 2)


# ---------------------------------------------------------------------------
# Pure-JAX reference (exact PyTorch forward semantics)
# ---------------------------------------------------------------------------
def reference_forward(x, weight, gamma, beta, *, stride=2, pad=1, eps=1e-5,
                      conv_dtype=jnp.float32):
    conv = jax.lax.conv_general_dilated(
        x.astype(conv_dtype), weight.astype(conv_dtype),
        window_strides=(stride, stride),
        padding=((pad, pad), (pad, pad)),
        dimension_numbers=("NCHW", "OIHW", "NCHW"),
        preferred_element_type=jnp.float32)
    mean = conv.mean(axis=(0, 2, 3), keepdims=True)
    var = ((conv - mean) ** 2).mean(axis=(0, 2, 3), keepdims=True)
    xhat = (conv - mean) * jax.lax.rsqrt(var + eps)
    y = xhat * gamma.reshape(1, -1, 1, 1) + beta.reshape(1, -1, 1, 1)
    return jnp.where(y >= 0, y, 0.2 * y)


if __name__ == "__main__":
    def run_case(name, n, cin, h, w, cout, tm_max):
        key = jax.random.PRNGKey(0)
        kx, kw_ = jax.random.split(key)
        x = jax.random.normal(kx, (n, cin, h, w), dtype=jnp.float32)
        weight = 0.1 * jax.random.normal(kw_, (cout, cin, 4, 4), dtype=jnp.float32)
        gamma = jnp.ones((cout,), dtype=jnp.float32)   # BatchNorm2d default init
        beta = jnp.zeros((cout,), dtype=jnp.float32)

        out = jax.block_until_ready(
            encoder_forward(x, weight, gamma, beta, tm_max=tm_max))
        assert out.shape == (n, cout, h // 2, w // 2), (name, out.shape)

        # Tight check vs. a reference using the same bf16 conv operands (f32 accum).
        ref_b = reference_forward(x, weight, gamma, beta, conv_dtype=jnp.bfloat16)
        err_b = float(jnp.abs(out - ref_b).max())
        assert jnp.allclose(out, ref_b, atol=3e-3, rtol=3e-3), (name, err_b)

        # Fidelity vs. exact f32 PyTorch semantics (looser: bf16 MXU operands).
        ref_f = reference_forward(x, weight, gamma, beta, conv_dtype=jnp.float32)
        err_f = float(jnp.abs(out - ref_f).max())
        assert jnp.allclose(out, ref_f, atol=5e-2, rtol=5e-2), (name, err_f)

    # Encoder(depth_in=4, n_filters=16): small K -> recompute-conv path; tm_max=64
    # forces a 2-tile grid so the 2-way-sharded cross-tile stats accumulation runs.
    run_case("small_k", n=2, cin=4, h=16, w=16, cout=16, tm_max=64)
    # Deeper-layer shape (Cin=32): kp=512 > 2*cp -> stored-conv path (pass 2 elementwise).
    run_case("large_k", n=2, cin=32, h=8, w=8, cout=16, tm_max=16)

    print("KERNEL_OK")
</pallas_src>

<mosaic_0001>
module attributes {stable_mosaic.version = 11 : i64} {
  func.func @stats_kernel(%arg0: i32, %arg1: i32, %arg2: memref<64x128xbf16, #tpu.memory_space<vmem>>, %arg3: memref<128x128xbf16, #tpu.memory_space<vmem>>, %arg4: memref<8x128xf32, #tpu.memory_space<vmem>>, %arg5: memref<8x128xf32, #tpu.memory_space<vmem>>) attributes {dimension_semantics = [#tpu.dimension_semantics<parallel>, #tpu.dimension_semantics<arbitrary>], iteration_bounds = array<i64: 2, 1>, scalar_prefetch = 0 : i64, scratch_operands = 1 : i64, tpu.core_type = #tpu.core_type<tc>, window_params = [{transform_indices = @transform_0, window_bounds = array<i64: 64, 128>}, {pipeline_mode = #tpu.pipeline_mode<synchronous>, transform_indices = @transform_1, window_bounds = array<i64: 128, 128>}, {transform_indices = @transform_2, window_bounds = array<i64: 8, 128>}]} {
    %c0_i32 = arith.constant 0 : i32
    %0 = arith.cmpi eq, %arg1, %c0_i32 : i32
    %1 = arith.extui %0 : i1 to i32
    %c0_i32_0 = arith.constant 0 : i32
    %2 = arith.cmpi ne, %1, %c0_i32_0 : i32
    scf.if %2 {
      %cst_15 = arith.constant 0.000000e+00 : f32
      %20 = vector.broadcast %cst_15 : f32 to vector<8x128xf32>
      %c0_16 = arith.constant 0 : index
      %c0_17 = arith.constant 0 : index
      %21 = vector.load %arg5[%c0_16, %c0_17] : memref<8x128xf32, #tpu.memory_space<vmem>>, vector<8x128xf32>
      tpu.vector_store %arg5[%c0_16, %c0_17], %20 {strides = array<i32>} : memref<8x128xf32, #tpu.memory_space<vmem>>, vector<8x128xf32>,
    } else {
    }
    %c0 = arith.constant 0 : index
    %c0_1 = arith.constant 0 : index
    %3 = vector.load %arg2[%c0, %c0_1] : memref<64x128xbf16, #tpu.memory_space<vmem>>, vector<64x128xbf16>
    %c0_2 = arith.constant 0 : index
    %c0_3 = arith.constant 0 : index
    %4 = vector.load %arg3[%c0_2, %c0_3] : memref<128x128xbf16, #tpu.memory_space<vmem>>, vector<128x128xbf16>
    %cst = arith.constant dense<0.000000e+00> : vector<64x128xf32>
    %5 = tpu.matmul %3, %4, %cst {dimension_numbers = #tpu.dot_dimension_numbers<[1], [0], [0], [1], [0, 0, 1, 1], [], []>} : vector<64x128xbf16>, vector<128x128xbf16>, vector<64x128xf32> -> vector<64x128xf32>
    %c0_4 = arith.constant 0 : index
    %c0_5 = arith.constant 0 : index
    %6 = vector.load %arg5[%c0_4, %c0_5] : memref<8x128xf32, #tpu.memory_space<vmem>>, vector<1x128xf32>
    %cst_6 = arith.constant dense<0.000000e+00> : vector<128xf32>
    %7 = vector.multi_reduction <add>, %5, %cst_6 [0] : vector<64x128xf32> to vector<128xf32>
    %8 = vector.shape_cast %7 : vector<128xf32> to vector<1x128xf32>
    %9 = arith.addf %6, %8 : vector<1x128xf32>
    %c0_7 = arith.constant 0 : index
    %c0_8 = arith.constant 0 : index
    %10 = vector.load %arg5[%c0_7, %c0_8] : memref<8x128xf32, #tpu.memory_space<vmem>>, vector<1x128xf32>
    tpu.vector_store %arg5[%c0_7, %c0_8], %9 {strides = array<i32>} : memref<8x128xf32, #tpu.memory_space<vmem>>, vector<1x128xf32>,
    %c1 = arith.constant 1 : index
    %c0_9 = arith.constant 0 : index
    %11 = vector.load %arg5[%c1, %c0_9] : memref<8x128xf32, #tpu.memory_space<vmem>>, vector<1x128xf32>
    %12 = arith.mulf %5, %5 : vector<64x128xf32>
    %cst_10 = arith.constant dense<0.000000e+00> : vector<128xf32>
    %13 = vector.multi_reduction <add>, %12, %cst_10 [0] : vector<64x128xf32> to vector<128xf32>
    %14 = vector.shape_cast %13 : vector<128xf32> to vector<1x128xf32>
    %15 = arith.addf %11, %14 : vector<1x128xf32>
    %c1_11 = arith.constant 1 : index
    %c0_12 = arith.constant 0 : index
    %16 = vector.load %arg5[%c1_11, %c0_12] : memref<8x128xf32, #tpu.memory_space<vmem>>, vector<1x128xf32>
    tpu.vector_store %arg5[%c1_11, %c0_12], %15 {strides = array<i32>} : memref<8x128xf32, #tpu.memory_space<vmem>>, vector<1x128xf32>,
    %c0_i32_13 = arith.constant 0 : i32
    %17 = arith.cmpi eq, %arg1, %c0_i32_13 : i32
    %18 = arith.extui %17 : i1 to i32
    %c0_i32_14 = arith.constant 0 : i32
    %19 = arith.cmpi ne, %18, %c0_i32_14 : i32
    scf.if %19 {
      %c0_15 = arith.constant 0 : index
      %c0_16 = arith.constant 0 : index
      %20 = vector.load %arg5[%c0_15, %c0_16] : memref<8x128xf32, #tpu.memory_space<vmem>>, vector<8x128xf32>
      %c0_17 = arith.constant 0 : index
      %c0_18 = arith.constant 0 : index
      %21 = vector.load %arg4[%c0_17, %c0_18] : memref<8x128xf32, #tpu.memory_space<vmem>>, vector<8x128xf32>
      tpu.vector_store %arg4[%c0_17, %c0_18], %20 {strides = array<i32>} : memref<8x128xf32, #tpu.memory_space<vmem>>, vector<8x128xf32>,
    } else {
    }
    return
  }
  func.func @transform_0(%arg0: i32, %arg1: i32) -> (i32, i32) {
    %c1_i32 = arith.constant 1 : i32
    %0 = arith.muli %arg0, %c1_i32 : i32
    %1 = arith.addi %0, %arg1 : i32
    %c0_i32 = arith.constant 0 : i32
    %c0_i32_0 = arith.constant 0 : i32
    return %1, %c0_i32 : i32, i32
  }
  func.func @transform_1(%arg0: i32, %arg1: i32) -> (i32, i32) {
    %c0_i32 = arith.constant 0 : i32
    %c0_i32_0 = arith.constant 0 : i32
    %c0_i32_1 = arith.constant 0 : i32
    return %c0_i32, %c0_i32_0 : i32, i32
  }
  func.func @transform_2(%arg0: i32, %arg1: i32) -> (i32, i32) {
    %c0_i32 = arith.constant 0 : i32
    %c0_i32_0 = arith.constant 0 : i32
    return %arg0, %c0_i32 : i32, i32
  }
}

</mosaic_0001>

<bundles_post_ra>
// kernel: tpu_custom_call.1
= control target key start
LH: loop header
LB: loop body
LE: loop exit
PB: predicated region body
PF: predicated region fallthrough
CT: control target
= control target key end

     0   :  { %7 = vsyncpa [#allocation4], 0  ;;  %s984_s0 = inlined_call_operand.hbm [shape: bf16[128,128], index: 0, kind: input, shape index: {}]   ;;  %s985_s1 = inlined_call_operand.hbm [shape: bf16[128,128], index: 1, kind: input, shape index: {}]   ;;  %s986_s2 = inlined_call_operand.hbm [shape: f32[16,128], index: 2, kind: output, shape index: {}]  }
   0x1   :  { %9 = vsyncpa [#allocation4 + $0x1], 0 }
   0x2   :  { %10 = vsyncpa [#allocation7], 0 }
   0x3   :  { %11 = vsyncpa [#allocation5], 0 }
   0x4   :  { %13 = vsyncpa [#allocation5 + $0x1], 0  ;;  %s822_s9 = smov 0   ;;  %s824_s10 = smov 0  }
   0x5   :  { %s826_s11 = smov 0   ;;  %s828_s12 = smov 0  }
   0x6   :  { %s830_s13 = smov 0   ;;  %s832_s14 = smov 0  }
   0x7 LB: > { %s478_s15 = sadd.s32 4294967295, %s801_s14   ;;  %s479_s16 = sadd.s32 4294967294, %s801_s14   ;;  %s801_s14 = sphi %s832_s14, %s19_s14   ;;  %s797_s13 = sphi %s830_s13, %s998_s13   ;;  %s793_s12 = sphi %s828_s12, %s997_s12   ;;  %s789_s11 = sphi %s826_s11, %s996_s11   ;;  %s785_s10 = sphi %s824_s10, %s995_s10   ;;  %s781_s9 = sphi %s822_s9, %s994_s9  }
   0x8   : > { %p53_p0 = scmp.ne.s32.totalorder %s785_s10, %s781_s9  ;;  %p856_p1 = scmp.eq.s32.totalorder %s478_s15, 0 }
   0x9   : > { %p860_p2 = scmp.eq.s32.totalorder %s478_s15, 1  ;;  %p104_p3 = scmp.eq.s32.totalorder %s479_s16, 1 }
   0xa   : > { %p866_p4 = por %p856_p1, %p53_p0  ;;  %p480_p5 = scmp.ge.s32.totalorder %s801_s14, 1 }
   0xb   : > { %p871_p6 = por %p104_p3, %p53_p0  ;;  %p111_p7 = scmp.lt.s32.totalorder %s801_s14, 3 }
   0xc   : > { %s122_s23 = sshll.u32 %s985_s1, 4  ;;  %s803_s25 = smov [#allocation6]   ;;  %s123_s23 = int_to_ptr.hbm [resolvable:$true] %s122_s23 }
   0xd   : > { %p879_p8 = pnand %p480_p5, %p111_p7  ;;  %s124_s26 = sshll.u32 %s803_s25, 4  ;;  %s125_s26 = int_to_ptr.vmem [resolvable:$true] %s124_s26 }
   0xe   : > { %p482_p11 = scmp.ge.s32.totalorder %s801_s14, 2  ;;  %s804_s27 = smov 64  }
   0xf   : > { %p587_p9 = pneg %p879_p8  ;;  %s805_s28 = smov 4  }
  0x10   : > { %s31_s29 = sadd.s32 1, %s797_s13  ;;  %s40_s30 = sadd.s32 1, %s789_s11 }
  0x11   : > { %p588_p10 = pnand %p587_p9, %p856_p1  ;;  %p33_p12 = scmp.ge.s32.totalorder %s31_s29, 2 }
  0x12   : > { %p47_p13 = scmp.ne.s32.totalorder %s789_s11, %s785_s10  ;;  %p48_p0 = scmp.eq.s32.totalorder %s801_s14, 0 }
  0x13   : > { %590 = dma.hbm_to_vmem [thread:$0]  (!%p588_p10), %s123_s23, 1024, %s125_s26, [#allocation7], %s804_s27, %s804_s27, %s805_s28  }
  0x14   : > { %s1000_s29 = smov (%p33_p12, %s31_s29), 0  ;;  %p898_p3 = por %p48_p0, %p47_p13 }
  0x15   : > { %p904_p5 = por %p860_p2, %p47_p13  ;;  %s37_s5 = ssub.s32 %s797_s13, %s1000_s29 }
  0x16   : > { %p600_p7 = scmp.lt.s32.totalorder %s801_s14, 2  ;;  %p38_p9 = scmp.eq.s32.totalorder %s37_s5, 0 }
  0x17   : > { %s138_s6 = sand.u32 1, %s789_s11   ;;  %s542_s15 = sshll.u32 %s797_s13, 5 }
  0x18   : > { %s483_s7 = sshll.u32 %s138_s6, 5  ;;  %s148_s22 = scalar_lea.hbm %s984_s0, %s542_s15 }
  0x19   : > { %s913_s8 = scalar_select %p38_p9, %s789_s11, %s40_s30  }
  0x1a   : > { %s142_s23 = scalar_lea.vmem [#allocation3], %s483_s7  ;;  %s149_s18 = sshll.u32 %s148_s22, 4  ;;  %s150_s18 = int_to_ptr.hbm [resolvable:$true] %s149_s18 }
  0x1b   : > { %s151_s25 = sshll.u32 %s142_s23, 4  ;;  %p592_p2 = pnand %p600_p7, %p898_p3  ;;  %s152_s25 = int_to_ptr.vmem [resolvable:$true] %s151_s25 }
  0x1c   : > { %s139_s26 = scalar_lea.sflag [#allocation4], %s138_s6  ;;  %163 = sbr.rel (%p879_p8) target bundleno = 243 (0xf3), region = 28 }
  0x1d   : > { %594 = dma.hbm_to_vmem [thread:$0]  (!%p592_p2), %s150_s18, 512, %s152_s25, %s139_s26, %s804_s27, %s804_s27, %s805_s28  }
  0x1e   : > { %s927_s30 = sand.u32 (!%p879_p8), 1, %s785_s10  }
  0x1f   : > { %s487_s5 = sshll.u32 (!%p879_p8), %s927_s30, 5  ;;  %s166_s7 = scalar_lea.sflag (!%p879_p8), [#allocation4], %s927_s30 }
  0x20   : > { %s931_s15 = scalar_lea.vmem (!%p879_p8), [#allocation3], %s487_s5 }
  0x21   : > { %768 = dma.done.wait (%p866_p4), %s166_s7, 512  }
  0x22   : > { %770 = vsyncadd (%p866_p4), %s166_s7, 4294966784 }
  0x23   : > { %772 = dma.done.wait (%p856_p1), [#allocation7], 1024  }
  0x24   : > { %774 = vsyncadd (%p856_p1), [#allocation7], 4294966272  ;;  %v554_v0 = vld [vmem:[#allocation6 + $0x38] sm:$0xff]  ;;  %v553_v1 = vld [vmem:[#allocation6 + $0x30] sm:$0xff]  ;;  %v806_v12 = vmov 0.0   ;;  %s489_s17 = sshll.u32 %s927_s30, 3 }
  0x25   : > { %299 = vmatpush.bf16.msra.mxu0 %v554_v0  ;;  %555 = vmatpush.bf16.msra.mxu1 %v554_v0  ;;  %v552_v2 = vld [vmem:[#allocation6 + $0x28] sm:$0xff]  ;;  %v551_v3 = vld [vmem:[#allocation6 + $0x20] sm:$0xff]  ;;  %v550_v4 = vld [vmem:[#allocation6 + $0x18] sm:$0xff]  ;;  %202 = vst [vmem:[#allocation2] sm:$0xff] %v806_v12  ;;  %s539_s19 = sshll.u32 %s793_s12, 3  ;;  %s195_s3 = scalar_lea.vmem [#allocation8], %s489_s17 }
  0x26   : > { %556 = vmatpush.bf16.msra.mxu2 %v554_v0  ;;  %557 = vmatpush.bf16.msra.mxu3 %v554_v0  ;;  %v549_v5 = vld [vmem:[#allocation6 + $0x10] sm:$0xff]  ;;  %v548_v6 = vld [vmem:[#allocation6 + $0x8] sm:$0xff]  ;;  %v547_v7 = vld [vmem:[#allocation6] sm:$0xff]  ;;  %s384_s28 = scalar_lea.hbm %s986_s2, %s539_s19  ;;  %s386_s6 = sshll.u32 %s195_s3, 4  ;;  %s387_s6 = int_to_ptr.vmem [resolvable:$true] %s386_s6 }
  0x27   : > { %v543_v8 = vld [vmem:[%s931_s15] sm:$0xff]  ;;  %v544_v9 = vld [vmem:[%s931_s15 + $0x8] sm:$0xff]  ;;  %v545_v10 = vld [vmem:[%s931_s15 + $0x10] sm:$0xff]  ;;  %s388_s16 = sshll.u32 %s384_s28, 4  ;;  %s374_s21 = scalar_lea.sflag [#allocation5], %s927_s30  ;;  %s389_s16 = int_to_ptr.hbm [resolvable:$true] %s388_s16 }
  0x28   : > { %v546_v11 = vld [vmem:[%s931_s15 + $0x18] sm:$0xff]  ;;  %s729_s22 = sshra.s32 %s389_s16, 4  ;;  %s735_s18 = scalar_lea.hbm %s986_s2, 16  ;;  %s730_s22 = int_to_ptr.hbm [resolvable:$true] %s729_s22 }
  0x29   : > { %300 = vmatpush.bf16.msra.mxu0 %v553_v1  ;;  %558 = vmatpush.bf16.msra.mxu1 %v553_v1  ;;  %s731_s23 = scalar_lea.hbm %s730_s22, 8  ;;  %p736_p10 = scmp.lt.s32.totalorder %s730_s22, %s986_s2 }
  0x2a   : > { %559 = vmatpush.bf16.msra.mxu2 %v553_v1  ;;  %560 = vmatpush.bf16.msra.mxu3 %v553_v1  ;;  %p732_p1 = scmp.ne.s32.totalorder %s730_s22, %s731_s23  ;;  %p737_p12 = scmp.lt.s32.totalorder %s735_s18, %s731_s23 }
  0x2c   : > { %v328_v52 = vld [vmem:[#allocation2] sm:$0x1]  ;;  %v344_v55 = vld [vmem:[#allocation2 + $0x1] sm:$0x1]  ;;  %p733_p4 = pnand %p732_p1, %p904_p5  ;;  %p738_p13 = por %p737_p12, %p736_p10 }
  0x2d   : > { %301 = vmatpush.bf16.msra.mxu0 %v552_v2  ;;  %561 = vmatpush.bf16.msra.mxu1 %v552_v2 }
  0x2e   : > { %562 = vmatpush.bf16.msra.mxu2 %v552_v2  ;;  %563 = vmatpush.bf16.msra.mxu3 %v552_v2  ;;  %p734_p8 = pneg %p733_p4 }
  0x30   : > { %p739_p0 = pnand %p738_p13, %p734_p8 }
  0x31   : > { %302 = vmatpush.bf16.msra.mxu0 %v551_v3  ;;  %564 = vmatpush.bf16.msra.mxu1 %v551_v3 }
  0x32   : > { %565 = vmatpush.bf16.msra.mxu2 %v551_v3  ;;  %566 = vmatpush.bf16.msra.mxu3 %v551_v3 }
  0x35   : > { %303 = vmatpush.bf16.msra.mxu0 %v550_v4  ;;  %567 = vmatpush.bf16.msra.mxu1 %v550_v4 }
  0x36   : > { %568 = vmatpush.bf16.msra.mxu2 %v550_v4  ;;  %569 = vmatpush.bf16.msra.mxu3 %v550_v4 }
  0x39   : > { %304 = vmatpush.bf16.msra.mxu0 %v549_v5  ;;  %570 = vmatpush.bf16.msra.mxu1 %v549_v5 }
  0x3a   : > { %571 = vmatpush.bf16.msra.mxu2 %v549_v5  ;;  %572 = vmatpush.bf16.msra.mxu3 %v549_v5 }
  0x3d   : > { %305 = vmatpush.bf16.msra.mxu0 %v548_v6  ;;  %573 = vmatpush.bf16.msra.mxu1 %v548_v6 }
  0x3e   : > { %574 = vmatpush.bf16.msra.mxu2 %v548_v6  ;;  %575 = vmatpush.bf16.msra.mxu3 %v548_v6 }
  0x41   : > { %306 = vmatpush.bf16.msra.mxu0 %v547_v7  ;;  %576 = vmatpush.bf16.msra.mxu1 %v547_v7 }
  0x42   : > { %577 = vmatpush.bf16.msra.mxu2 %v547_v7  ;;  %578 = vmatpush.bf16.msra.mxu3 %v547_v7 }
  0x44   : > { %307 = vmatmul.bf16.vlgmr.msra.gmra.mxu0 %v543_v8  ;;  %312 = vmatmul.bf16.vlgmr.msra.gmra.mxu1 %v544_v9 }
  0x45   : > { %317 = vmatmul.bf16.vlgmr.msra.gmra.mxu2 %v545_v10  ;;  %322 = vmatmul.bf16.vlgmr.msra.gmra.mxu3 %v546_v11 }
  0xc1   : > { %v308_v13 = vpop.f32.mrf.mxu0  ;;  %v313_v14 = vpop.f32.mrf.mxu1 }
  0xc2   : > { %v345_v18 = vmul.f32 %v308_v13, %v308_v13  ;;  %v347_v22 = vmul.f32 %v313_v14, %v313_v14 }
  0xc8   : > { %v318_v15 = vpop.f32.mrf.mxu2  ;;  %v323_v16 = vpop.f32.mrf.mxu3 }
  0xc9   : > { %v310_v17 = vpop.f32.mrf.mxu0  ;;  %v315_v21 = vpop.f32.mrf.mxu1  ;;  %v349_v28 = vmul.f32 %v318_v15, %v318_v15  ;;  %v351_v36 = vmul.f32 %v323_v16, %v323_v16 }
  0xca   : > { %v329_v19 = vadd.f32 %v310_v17, %v308_v13  ;;  %v346_v20 = vmul.f32 %v310_v17, %v310_v17  ;;  %v348_v26 = vmul.f32 %v315_v21, %v315_v21 }
  0xcc   : > { %v353_v23 = vadd.f32 %v346_v20, %v345_v18  ;;  %v330_v24 = vadd.f32 %v329_v19, %v313_v14 }
  0xce   : > { %v331_v25 = vadd.f32 %v330_v24, %v315_v21  ;;  %v354_v27 = vadd.f32 %v353_v23, %v347_v22 }
  0xd0   : > { %v355_v29 = vadd.f32 %v354_v27, %v348_v26  ;;  %v320_v30 = vpop.f32.mrf.mxu2  ;;  %v332_v31 = vadd.f32 %v331_v25, %v318_v15  ;;  %v325_v35 = vpop.f32.mrf.mxu3 }
  0xd1   : > { %v350_v33 = vmul.f32 %v320_v30, %v320_v30  ;;  %v352_v40 = vmul.f32 %v325_v35, %v325_v35 }
  0xd2   : > { %v333_v32 = vadd.f32 %v332_v31, %v320_v30  ;;  %v356_v34 = vadd.f32 %v355_v29, %v349_v28 }
  0xd4   : > { %v357_v37 = vadd.f32 %v356_v34, %v350_v33  ;;  %v334_v38 = vadd.f32 %v333_v32, %v323_v16 }
  0xd6   : > { %v335_v39 = vadd.f32 %v334_v38, %v325_v35  ;;  %v358_v41 = vadd.f32 %v357_v37, %v351_v36 }
  0xd8   : > { %v336_v42 = vrot.slane %v335_v39, 4  ;;  %v359_v43 = vadd.f32 %v358_v41, %v352_v40 }
  0xda   : > { %v337_v44 = vadd.f32 %v336_v42, %v335_v39  ;;  %v360_v45 = vrot.slane %v359_v43, 4 }
  0xdc   : > { %v338_v46 = vrot.slane %v337_v44, 2  ;;  %v361_v47 = vadd.f32 %v360_v45, %v359_v43 }
  0xde   : > { %v339_v48 = vadd.f32 %v338_v46, %v337_v44  ;;  %v362_v49 = vrot.slane %v361_v47, 2 }
  0xe0   : > { %v340_v50 = vrot.slane %v339_v48, 1  ;;  %v363_v51 = vadd.f32 %v362_v49, %v361_v47 }
  0xe2   : > { %v341_v53 = vadd.f32 %v340_v50, %v339_v48  ;;  %v364_v54 = vrot.slane %v363_v51, 1 }
  0xe4   : > { %v342_v56 = vadd.f32 %v341_v53, %v328_v52  ;;  %v365_v57 = vadd.f32 %v364_v54, %v363_v51 }
  0xe6   : > { %343 = vst [vmem:[#allocation2] sm:$0x1] %v342_v56  ;;  %v366_v58 = vadd.f32 %v365_v57, %v344_v55 }
  0xe8   : > { %367 = vst [vmem:[#allocation2 + $0x1] sm:$0x1] %v366_v58 }
  0xef   : > { %v371_v59 = vld [vmem:[#allocation2] sm:$0xff] }
  0xf0   : > { %372 = vst [vmem:[%s195_s3] sm:$0xff] %v371_v59 }
  0xf1   : > { %742 = shalt.err (!%p739_p0)
}
  0xf2   : > { %585 = dma.vmem_to_hbm [thread:$0]  (%p904_p5), %s387_s6, 128, %s389_s16, %s374_s21  }
  0xf3 PF: > { %s400_s30 = sand.u32 1, %s781_s9   ;;  %p596_p3 = pnand %p482_p11, %p871_p6 }
  0xf4   : > { %s401_s7 = scalar_lea.sflag [#allocation5], %s400_s30 }
  0xf5   : > { %p597_p7 = pneg %p596_p3 }
  0xf7   : > { %776 = dma.done.wait (%p597_p7), %s401_s7, 128  }
  0xf8   : > { %778 = vsyncadd (%p597_p7), %s401_s7, 4294967168  ;;  %s19_s14 = sadd.s32 1, %s801_s14   ;;  %s994_s9 = smov %s785_s10 }
  0xf9   : > { %p16_p9 = scmp.ge.s32.totalorder %s19_s14, 4   ;;  %s995_s10 = smov %s789_s11 }
  0xfa   : > { %s996_s11 = smov %s913_s8  ;;  %s997_s12 = smov %s797_s13 }
  0xfb   : > { %s998_s13 = smov %s1000_s29  ;;  %18 = sbr.rel (!%p16_p9) target bundleno = 7 (0x7), region = 85 }
 0x100   :  { %407 = vsyncpa [#allocation4], 1 }
 0x101   :  { %409 = vsyncpa [#allocation4 + $0x1], 1 }
 0x102   :  { %410 = vsyncpa [#allocation7], 1 }
 0x103   :  { %411 = vsyncpa [#allocation5], 1 }
 0x104   :  { %413 = vsyncpa [#allocation5 + $0x1], 1 }

</bundles_post_ra>
